<compile_context>
chip_gen: v5e
topology: v5e:2x2
jax: 0.10.0
libtpu: 0.0.40
codegen_flags: <defaults>
</compile_context>

<pallas_src>
import jax
import jax.numpy as jnp
from jax import lax
from jax.experimental import pallas as pl
from jax.experimental.pallas import tpu as pltpu


def _cdiv(a, b):
    return -(-a // b)


def _round_up(a, b):
    return _cdiv(a, b) * b


# ---------------------------------------------------------------------------
# Fast path: embedding tables resident in VMEM, gather via dynamic row reads.
# ---------------------------------------------------------------------------
def _vmem_gather_kernel(idx_ref,               # SMEM (3, TB) int32
                        emb_e_ref, emb_r_ref,  # VMEM-resident tables
                        h_out, r_out, t_out):  # (TB,D_e)/(TB,D_r)/(TB,D_e) VMEM
    tb = h_out.shape[0]

    def body(j, carry):
        h_out[j, :] = emb_e_ref[idx_ref[0, j], :]
        r_out[j, :] = emb_r_ref[idx_ref[1, j], :]
        t_out[j, :] = emb_e_ref[idx_ref[2, j], :]
        return carry

    # Unrolled so VMEM row loads / stores / SMEM index reads co-issue.
    lax.fori_loop(0, tb, body, 0, unroll=8)


# ---------------------------------------------------------------------------
# DMA path: per-row HBM gather, chunked issue + one aggregate wait per stream.
# ---------------------------------------------------------------------------
def _make_dma_gather_kernel(tb, chunk_rows):
    bounds = list(range(0, tb, chunk_rows)) + [tb]
    chunks = [(bounds[i], bounds[i + 1] - bounds[i])
              for i in range(len(bounds) - 1)]

    def kernel(idx_ref,                    # SMEM (3, TB) int32
               emb_e_hbm, emb_r_hbm,       # HBM refs (memory_space=pl.ANY)
               h_out, r_out, t_out,        # VMEM output blocks
               sems):                      # DMA semaphores, shape (3,)

        def issue_chunk(base, n):
            def issue(j, carry):
                row = base + j
                pltpu.make_async_copy(emb_e_hbm.at[idx_ref[0, row]],
                                      h_out.at[row], sems.at[0]).start()
                pltpu.make_async_copy(emb_r_hbm.at[idx_ref[1, row]],
                                      r_out.at[row], sems.at[1]).start()
                pltpu.make_async_copy(emb_e_hbm.at[idx_ref[2, row]],
                                      t_out.at[row], sems.at[2]).start()
                return carry
            # Unrolled: descriptor pushes (vector-misc slot), SMEM index loads
            # and loop bookkeeping (scalar slots) co-issue across iterations.
            lax.fori_loop(0, n, issue, 0, unroll=8)

        def wait_chunk(n):
            # ONE aggregate wait per stream: DMA semaphores count bytes, so a
            # fake descriptor covering n rows consumes exactly n row-copies'
            # worth from that stream's semaphore.  Nothing reads the gathered
            # rows before the final wait, so it does not matter *which* rows'
            # bytes satisfied an intermediate wait.
            pltpu.make_async_copy(h_out.at[pl.ds(0, n)],
                                  h_out.at[pl.ds(0, n)], sems.at[0]).wait()
            pltpu.make_async_copy(r_out.at[pl.ds(0, n)],
                                  r_out.at[pl.ds(0, n)], sems.at[1]).wait()
            pltpu.make_async_copy(t_out.at[pl.ds(0, n)],
                                  t_out.at[pl.ds(0, n)], sems.at[2]).wait()

        prev = None
        for base, n in chunks:             # static Python chunking
            issue_chunk(base, n)           # issue chunk c ...
            if prev is not None:
                wait_chunk(prev)           # ... while draining chunk c-1
            prev = n
        wait_chunk(prev)                   # drain the final chunk

    return kernel


def _tpu_vmem_capacity_bytes():
    try:
        return int(pltpu.get_tpu_info().vmem_capacity_bytes)
    except Exception:
        return 64 * 1024 * 1024            # conservative (v7x-sized) fallback


def lookup_embedding(x, emb_e, emb_r, *, tb=1024, force_dma_path=False):
    """x: (B, 3) int; emb_e: (n_e, D_e); emb_r: (n_r, D_r). Returns (h, r, t)."""
    B = x.shape[0]
    n_e, D_e = emb_e.shape
    n_r, D_r = emb_r.shape
    dtype = emb_e.dtype
    itemsize = jnp.dtype(dtype).itemsize

    # Generation-aware VMEM budgets (v7x: 64 MiB physical / 32 MiB scoped
    # default; v5e/v6e: 128 MiB physical -> ~2x larger budgets).
    vmem_cap = _tpu_vmem_capacity_bytes()
    if vmem_cap >= 96 * 1024 * 1024:       # v5e / v6e
        tile_budget = 48 * 1024 * 1024
        vmem_limit = 64 * 1024 * 1024
    else:                                  # v7x (or unknown -> conservative)
        tile_budget = 24 * 1024 * 1024
        vmem_limit = 32 * 1024 * 1024

    # Small-table fast path: both tables resident in VMEM (counted x2 to allow
    # for pipeline buffering), gathered with dynamic row reads.
    table_bytes = (n_e * D_e + n_r * D_r) * itemsize
    use_vmem_tables = (not force_dma_path) and (2 * table_bytes <= tile_budget // 2)

    # Tile size: as large as the remaining budget allows (outputs are
    # double-buffered), aligned to the packed-sublane minimum of the dtype.
    sub_align = 8 * max(1, 4 // itemsize)      # 8 f32 / 16 bf16 / 32 int8|fp8
    bytes_per_triple = (2 * D_e + D_r) * itemsize
    out_budget = tile_budget - (2 * table_bytes if use_vmem_tables else 0)
    tb_cap = max(sub_align, out_budget // (2 * bytes_per_triple))
    tb = min(int(tb), int(tb_cap))
    tb = max(sub_align, (tb // sub_align) * sub_align)
    tb = min(tb, _round_up(B, sub_align))      # don't exceed (rounded-up) batch

    n_steps = _cdiv(B, tb)
    # v7x megacore balance: bias toward an even number of grid steps so the two
    # TensorCores get equal halves (harmless on single-TC v5e/v6e).
    if n_steps > 1 and n_steps % 2 == 1:
        tb_even = _round_up(_cdiv(B, n_steps + 1), sub_align)
        if tb_even >= sub_align:
            tb = tb_even
            n_steps = _cdiv(B, tb)
    B_pad = n_steps * tb

    # (3, B_pad) layout: long axis last so the per-step SMEM block stays small.
    idx = jnp.transpose(x.astype(jnp.int32))           # (3, B)
    if B_pad != B:
        idx = jnp.pad(idx, ((0, 0), (0, B_pad - B)))   # pad with index 0 (valid)

    idx_spec = pl.BlockSpec((3, tb), lambda i: (0, i),
                            memory_space=pltpu.MemorySpace.SMEM)
    out_specs = [
        pl.BlockSpec((tb, D_e), lambda i: (i, 0)),
        pl.BlockSpec((tb, D_r), lambda i: (i, 0)),
        pl.BlockSpec((tb, D_e), lambda i: (i, 0)),
    ]

    if use_vmem_tables:
        kernel = _vmem_gather_kernel
        in_specs = [
            idx_spec,
            pl.BlockSpec((n_e, D_e), lambda i: (0, 0)),  # table resident in VMEM
            pl.BlockSpec((n_r, D_r), lambda i: (0, 0)),
        ]
        scratch_shapes = []
    else:
        kernel = _make_dma_gather_kernel(tb, chunk_rows=min(tb, 256))
        in_specs = [
            idx_spec,
            pl.BlockSpec(memory_space=pl.ANY),   # emb_e stays in HBM (h & t)
            pl.BlockSpec(memory_space=pl.ANY),   # emb_r stays in HBM
        ]
        scratch_shapes = [pltpu.SemaphoreType.DMA((3,))]

    grid_spec = pltpu.PrefetchScalarGridSpec(
        num_scalar_prefetch=0,
        grid=(n_steps,),
        in_specs=in_specs,
        out_specs=out_specs,
        scratch_shapes=scratch_shapes,
    )

    # Pure memory kernel: rows read + rows written (+ index / table bytes).
    bytes_moved = (2 * B_pad * bytes_per_triple + idx.size * 4
                   + (table_bytes if use_vmem_tables else 0))

    h, r, t = pl.pallas_call(
        kernel,
        out_shape=(
            jax.ShapeDtypeStruct((B_pad, D_e), dtype),
            jax.ShapeDtypeStruct((B_pad, D_r), dtype),
            jax.ShapeDtypeStruct((B_pad, D_e), dtype),
        ),
        grid_spec=grid_spec,
        compiler_params=pltpu.CompilerParams(
            dimension_semantics=("parallel",),   # disjoint output blocks
            vmem_limit_bytes=vmem_limit,
        ),
        cost_estimate=pl.CostEstimate(
            flops=0, transcendentals=0, bytes_accessed=int(bytes_moved)),
    )(idx, emb_e, emb_r)

    if B_pad != B:
        h, r, t = h[:B], r[:B], t[:B]
    return h, r, t


def xavier_uniform(key, shape, dtype=jnp.float32):
    # torch.nn.init.xavier_uniform_ on a (fan_out, fan_in) = (num, dim) matrix
    fan_out, fan_in = shape
    bound = (6.0 / (fan_in + fan_out)) ** 0.5
    return jax.random.uniform(key, shape, dtype, minval=-bound, maxval=bound)


if __name__ == "__main__":
    # Small deterministic setup consistent with the module; emb_dim is a
    # multiple of 128 so gathered rows / output stores are lane-dense.
    num_entities = 16
    num_relations = 8
    emb_dim = 128
    batch = 8

    key = jax.random.PRNGKey(0)
    k_e, k_r, k_x = jax.random.split(key, 3)

    emb_e = xavier_uniform(k_e, (num_entities, emb_dim))
    emb_r = xavier_uniform(k_r, (num_relations, emb_dim))

    h_idx = jax.random.randint(k_x, (batch,), 0, num_entities, dtype=jnp.int32)
    r_idx = jax.random.randint(jax.random.fold_in(k_x, 1), (batch,), 0,
                               num_relations, dtype=jnp.int32)
    t_idx = jax.random.randint(jax.random.fold_in(k_x, 2), (batch,), 0,
                               num_entities, dtype=jnp.int32)
    x = jnp.stack([h_idx, r_idx, t_idx], axis=1)   # (B, 3) int32

    # Reference (same semantics as nn.Embedding lookups).
    ref_h = emb_e[x[:, 0]]
    ref_r = emb_r[x[:, 1]]
    ref_t = emb_e[x[:, 2]]

    # Fast path (tables resident in VMEM) -- the common KGE configuration.
    h1, r1, t1 = lookup_embedding(x, emb_e, emb_r)
    jax.block_until_ready((h1, r1, t1))
    assert jnp.array_equal(h1, ref_h)
    assert jnp.array_equal(r1, ref_r)
    assert jnp.array_equal(t1, ref_t)

    # DMA path (large-table fallback), exercised explicitly for coverage.
    h2, r2, t2 = lookup_embedding(x, emb_e, emb_r, force_dma_path=True)
    jax.block_until_ready((h2, r2, t2))
    assert jnp.array_equal(h2, ref_h)
    assert jnp.array_equal(r2, ref_r)
    assert jnp.array_equal(t2, ref_t)

    print("KERNEL_OK")
</pallas_src>

<mosaic_0001>
module attributes {stable_mosaic.version = 11 : i64} {
  func.func @_vmem_gather_kernel(%arg0: i32, %arg1: memref<3x8xi32, #tpu.memory_space<smem>>, %arg2: memref<16x128xf32, #tpu.memory_space<vmem>>, %arg3: memref<8x128xf32, #tpu.memory_space<vmem>>, %arg4: memref<8x128xf32, #tpu.memory_space<vmem>>, %arg5: memref<8x128xf32, #tpu.memory_space<vmem>>, %arg6: memref<8x128xf32, #tpu.memory_space<vmem>>) attributes {dimension_semantics = [#tpu.dimension_semantics<parallel>], iteration_bounds = array<i64: 1>, scalar_prefetch = 0 : i64, scratch_operands = 0 : i64, tpu.core_type = #tpu.core_type<tc>, window_params = [{transform_indices = @transform_0, window_bounds = array<i64: 3, 8>}, {pipeline_mode = #tpu.pipeline_mode<synchronous>, transform_indices = @transform_1, window_bounds = array<i64: 16, 128>}, {pipeline_mode = #tpu.pipeline_mode<synchronous>, transform_indices = @transform_2, window_bounds = array<i64: 8, 128>}, {transform_indices = @transform_3, window_bounds = array<i64: 8, 128>}, {transform_indices = @transform_4, window_bounds = array<i64: 8, 128>}, {transform_indices = @transform_5, window_bounds = array<i64: 8, 128>}]} {
    %c0_i32 = arith.constant 0 : i32
    %c0 = arith.constant 0 : index
    %0 = arith.index_cast %c0_i32 : i32 to index
    %1 = memref.load %arg1[%c0, %0] : memref<3x8xi32, #tpu.memory_space<smem>>
    %2 = arith.index_cast %1 : i32 to index
    %c0_0 = arith.constant 0 : index
    %3 = vector.load %arg2[%2, %c0_0] : memref<16x128xf32, #tpu.memory_space<vmem>>, vector<1x128xf32>
    %4 = vector.shape_cast %3 : vector<1x128xf32> to vector<128xf32>
    %5 = arith.index_cast %c0_i32 : i32 to index
    %c0_1 = arith.constant 0 : index
    %6 = vector.load %arg4[%5, %c0_1] : memref<8x128xf32, #tpu.memory_space<vmem>>, vector<1x128xf32>
    %7 = vector.shape_cast %6 : vector<1x128xf32> to vector<128xf32>
    %8 = vector.shape_cast %4 : vector<128xf32> to vector<1x128xf32>
    tpu.vector_store %arg4[%5, %c0_1], %8 {strides = array<i32>} : memref<8x128xf32, #tpu.memory_space<vmem>>, vector<1x128xf32>,
    %c1 = arith.constant 1 : index
    %9 = arith.index_cast %c0_i32 : i32 to index
    %10 = memref.load %arg1[%c1, %9] : memref<3x8xi32, #tpu.memory_space<smem>>
    %11 = arith.index_cast %10 : i32 to index
    %c0_2 = arith.constant 0 : index
    %12 = vector.load %arg3[%11, %c0_2] : memref<8x128xf32, #tpu.memory_space<vmem>>, vector<1x128xf32>
    %13 = vector.shape_cast %12 : vector<1x128xf32> to vector<128xf32>
    %14 = arith.index_cast %c0_i32 : i32 to index
    %c0_3 = arith.constant 0 : index
    %15 = vector.load %arg5[%14, %c0_3] : memref<8x128xf32, #tpu.memory_space<vmem>>, vector<1x128xf32>
    %16 = vector.shape_cast %15 : vector<1x128xf32> to vector<128xf32>
    %17 = vector.shape_cast %13 : vector<128xf32> to vector<1x128xf32>
    tpu.vector_store %arg5[%14, %c0_3], %17 {strides = array<i32>} : memref<8x128xf32, #tpu.memory_space<vmem>>, vector<1x128xf32>,
    %c2 = arith.constant 2 : index
    %18 = arith.index_cast %c0_i32 : i32 to index
    %19 = memref.load %arg1[%c2, %18] : memref<3x8xi32, #tpu.memory_space<smem>>
    %20 = arith.index_cast %19 : i32 to index
    %c0_4 = arith.constant 0 : index
    %21 = vector.load %arg2[%20, %c0_4] : memref<16x128xf32, #tpu.memory_space<vmem>>, vector<1x128xf32>
    %22 = vector.shape_cast %21 : vector<1x128xf32> to vector<128xf32>
    %23 = arith.index_cast %c0_i32 : i32 to index
    %c0_5 = arith.constant 0 : index
    %24 = vector.load %arg6[%23, %c0_5] : memref<8x128xf32, #tpu.memory_space<vmem>>, vector<1x128xf32>
    %25 = vector.shape_cast %24 : vector<1x128xf32> to vector<128xf32>
    %26 = vector.shape_cast %22 : vector<128xf32> to vector<1x128xf32>
    tpu.vector_store %arg6[%23, %c0_5], %26 {strides = array<i32>} : memref<8x128xf32, #tpu.memory_space<vmem>>, vector<1x128xf32>,
    %c1_i32 = arith.constant 1 : i32
    %c0_6 = arith.constant 0 : index
    %27 = arith.index_cast %c1_i32 : i32 to index
    %28 = memref.load %arg1[%c0_6, %27] : memref<3x8xi32, #tpu.memory_space<smem>>
    %29 = arith.index_cast %28 : i32 to index
    %c0_7 = arith.constant 0 : index
    %30 = vector.load %arg2[%29, %c0_7] : memref<16x128xf32, #tpu.memory_space<vmem>>, vector<1x128xf32>
    %31 = vector.shape_cast %30 : vector<1x128xf32> to vector<128xf32>
    %32 = arith.index_cast %c1_i32 : i32 to index
    %c0_8 = arith.constant 0 : index
    %33 = vector.load %arg4[%32, %c0_8] : memref<8x128xf32, #tpu.memory_space<vmem>>, vector<1x128xf32>
    %34 = vector.shape_cast %33 : vector<1x128xf32> to vector<128xf32>
    %35 = vector.shape_cast %31 : vector<128xf32> to vector<1x128xf32>
    tpu.vector_store %arg4[%32, %c0_8], %35 {strides = array<i32>} : memref<8x128xf32, #tpu.memory_space<vmem>>, vector<1x128xf32>,
    %c1_9 = arith.constant 1 : index
    %36 = arith.index_cast %c1_i32 : i32 to index
    %37 = memref.load %arg1[%c1_9, %36] : memref<3x8xi32, #tpu.memory_space<smem>>
    %38 = arith.index_cast %37 : i32 to index
    %c0_10 = arith.constant 0 : index
    %39 = vector.load %arg3[%38, %c0_10] : memref<8x128xf32, #tpu.memory_space<vmem>>, vector<1x128xf32>
    %40 = vector.shape_cast %39 : vector<1x128xf32> to vector<128xf32>
    %41 = arith.index_cast %c1_i32 : i32 to index
    %c0_11 = arith.constant 0 : index
    %42 = vector.load %arg5[%41, %c0_11] : memref<8x128xf32, #tpu.memory_space<vmem>>, vector<1x128xf32>
    %43 = vector.shape_cast %42 : vector<1x128xf32> to vector<128xf32>
    %44 = vector.shape_cast %40 : vector<128xf32> to vector<1x128xf32>
    tpu.vector_store %arg5[%41, %c0_11], %44 {strides = array<i32>} : memref<8x128xf32, #tpu.memory_space<vmem>>, vector<1x128xf32>,
    %c2_12 = arith.constant 2 : index
    %45 = arith.index_cast %c1_i32 : i32 to index
    %46 = memref.load %arg1[%c2_12, %45] : memref<3x8xi32, #tpu.memory_space<smem>>
    %47 = arith.index_cast %46 : i32 to index
    %c0_13 = arith.constant 0 : index
    %48 = vector.load %arg2[%47, %c0_13] : memref<16x128xf32, #tpu.memory_space<vmem>>, vector<1x128xf32>
    %49 = vector.shape_cast %48 : vector<1x128xf32> to vector<128xf32>
    %50 = arith.index_cast %c1_i32 : i32 to index
    %c0_14 = arith.constant 0 : index
    %51 = vector.load %arg6[%50, %c0_14] : memref<8x128xf32, #tpu.memory_space<vmem>>, vector<1x128xf32>
    %52 = vector.shape_cast %51 : vector<1x128xf32> to vector<128xf32>
    %53 = vector.shape_cast %49 : vector<128xf32> to vector<1x128xf32>
    tpu.vector_store %arg6[%50, %c0_14], %53 {strides = array<i32>} : memref<8x128xf32, #tpu.memory_space<vmem>>, vector<1x128xf32>,
    %c2_i32 = arith.constant 2 : i32
    %c0_15 = arith.constant 0 : index
    %54 = arith.index_cast %c2_i32 : i32 to index
    %55 = memref.load %arg1[%c0_15, %54] : memref<3x8xi32, #tpu.memory_space<smem>>
    %56 = arith.index_cast %55 : i32 to index
    %c0_16 = arith.constant 0 : index
    %57 = vector.load %arg2[%56, %c0_16] : memref<16x128xf32, #tpu.memory_space<vmem>>, vector<1x128xf32>
    %58 = vector.shape_cast %57 : vector<1x128xf32> to vector<128xf32>
    %59 = arith.index_cast %c2_i32 : i32 to index
    %c0_17 = arith.constant 0 : index
    %60 = vector.load %arg4[%59, %c0_17] : memref<8x128xf32, #tpu.memory_space<vmem>>, vector<1x128xf32>
    %61 = vector.shape_cast %60 : vector<1x128xf32> to vector<128xf32>
    %62 = vector.shape_cast %58 : vector<128xf32> to vector<1x128xf32>
    tpu.vector_store %arg4[%59, %c0_17], %62 {strides = array<i32>} : memref<8x128xf32, #tpu.memory_space<vmem>>, vector<1x128xf32>,
    %c1_18 = arith.constant 1 : index
    %63 = arith.index_cast %c2_i32 : i32 to index
    %64 = memref.load %arg1[%c1_18, %63] : memref<3x8xi32, #tpu.memory_space<smem>>
    %65 = arith.index_cast %64 : i32 to index
    %c0_19 = arith.constant 0 : index
    %66 = vector.load %arg3[%65, %c0_19] : memref<8x128xf32, #tpu.memory_space<vmem>>, vector<1x128xf32>
    %67 = vector.shape_cast %66 : vector<1x128xf32> to vector<128xf32>
    %68 = arith.index_cast %c2_i32 : i32 to index
    %c0_20 = arith.constant 0 : index
    %69 = vector.load %arg5[%68, %c0_20] : memref<8x128xf32, #tpu.memory_space<vmem>>, vector<1x128xf32>
    %70 = vector.shape_cast %69 : vector<1x128xf32> to vector<128xf32>
    %71 = vector.shape_cast %67 : vector<128xf32> to vector<1x128xf32>
    tpu.vector_store %arg5[%68, %c0_20], %71 {strides = array<i32>} : memref<8x128xf32, #tpu.memory_space<vmem>>, vector<1x128xf32>,
    %c2_21 = arith.constant 2 : index
    %72 = arith.index_cast %c2_i32 : i32 to index
    %73 = memref.load %arg1[%c2_21, %72] : memref<3x8xi32, #tpu.memory_space<smem>>
    %74 = arith.index_cast %73 : i32 to index
    %c0_22 = arith.constant 0 : index
    %75 = vector.load %arg2[%74, %c0_22] : memref<16x128xf32, #tpu.memory_space<vmem>>, vector<1x128xf32>
    %76 = vector.shape_cast %75 : vector<1x128xf32> to vector<128xf32>
    %77 = arith.index_cast %c2_i32 : i32 to index
    %c0_23 = arith.constant 0 : index
    %78 = vector.load %arg6[%77, %c0_23] : memref<8x128xf32, #tpu.memory_space<vmem>>, vector<1x128xf32>
    %79 = vector.shape_cast %78 : vector<1x128xf32> to vector<128xf32>
    %80 = vector.shape_cast %76 : vector<128xf32> to vector<1x128xf32>
    tpu.vector_store %arg6[%77, %c0_23], %80 {strides = array<i32>} : memref<8x128xf32, #tpu.memory_space<vmem>>, vector<1x128xf32>,
    %c3_i32 = arith.constant 3 : i32
    %c0_24 = arith.constant 0 : index
    %81 = arith.index_cast %c3_i32 : i32 to index
    %82 = memref.load %arg1[%c0_24, %81] : memref<3x8xi32, #tpu.memory_space<smem>>
    %83 = arith.index_cast %82 : i32 to index
    %c0_25 = arith.constant 0 : index
    %84 = vector.load %arg2[%83, %c0_25] : memref<16x128xf32, #tpu.memory_space<vmem>>, vector<1x128xf32>
    %85 = vector.shape_cast %84 : vector<1x128xf32> to vector<128xf32>
    %86 = arith.index_cast %c3_i32 : i32 to index
    %c0_26 = arith.constant 0 : index
    %87 = vector.load %arg4[%86, %c0_26] : memref<8x128xf32, #tpu.memory_space<vmem>>, vector<1x128xf32>
    %88 = vector.shape_cast %87 : vector<1x128xf32> to vector<128xf32>
    %89 = vector.shape_cast %85 : vector<128xf32> to vector<1x128xf32>
    tpu.vector_store %arg4[%86, %c0_26], %89 {strides = array<i32>} : memref<8x128xf32, #tpu.memory_space<vmem>>, vector<1x128xf32>,
    %c1_27 = arith.constant 1 : index
    %90 = arith.index_cast %c3_i32 : i32 to index
    %91 = memref.load %arg1[%c1_27, %90] : memref<3x8xi32, #tpu.memory_space<smem>>
    %92 = arith.index_cast %91 : i32 to index
    %c0_28 = arith.constant 0 : index
    %93 = vector.load %arg3[%92, %c0_28] : memref<8x128xf32, #tpu.memory_space<vmem>>, vector<1x128xf32>
    %94 = vector.shape_cast %93 : vector<1x128xf32> to vector<128xf32>
    %95 = arith.index_cast %c3_i32 : i32 to index
    %c0_29 = arith.constant 0 : index
    %96 = vector.load %arg5[%95, %c0_29] : memref<8x128xf32, #tpu.memory_space<vmem>>, vector<1x128xf32>
    %97 = vector.shape_cast %96 : vector<1x128xf32> to vector<128xf32>
    %98 = vector.shape_cast %94 : vector<128xf32> to vector<1x128xf32>
    tpu.vector_store %arg5[%95, %c0_29], %98 {strides = array<i32>} : memref<8x128xf32, #tpu.memory_space<vmem>>, vector<1x128xf32>,
    %c2_30 = arith.constant 2 : index
    %99 = arith.index_cast %c3_i32 : i32 to index
    %100 = memref.load %arg1[%c2_30, %99] : memref<3x8xi32, #tpu.memory_space<smem>>
    %101 = arith.index_cast %100 : i32 to index
    %c0_31 = arith.constant 0 : index
    %102 = vector.load %arg2[%101, %c0_31] : memref<16x128xf32, #tpu.memory_space<vmem>>, vector<1x128xf32>
    %103 = vector.shape_cast %102 : vector<1x128xf32> to vector<128xf32>
    %104 = arith.index_cast %c3_i32 : i32 to index
    %c0_32 = arith.constant 0 : index
    %105 = vector.load %arg6[%104, %c0_32] : memref<8x128xf32, #tpu.memory_space<vmem>>, vector<1x128xf32>
    %106 = vector.shape_cast %105 : vector<1x128xf32> to vector<128xf32>
    %107 = vector.shape_cast %103 : vector<128xf32> to vector<1x128xf32>
    tpu.vector_store %arg6[%104, %c0_32], %107 {strides = array<i32>} : memref<8x128xf32, #tpu.memory_space<vmem>>, vector<1x128xf32>,
    %c4_i32 = arith.constant 4 : i32
    %c0_33 = arith.constant 0 : index
    %108 = arith.index_cast %c4_i32 : i32 to index
    %109 = memref.load %arg1[%c0_33, %108] : memref<3x8xi32, #tpu.memory_space<smem>>
    %110 = arith.index_cast %109 : i32 to index
    %c0_34 = arith.constant 0 : index
    %111 = vector.load %arg2[%110, %c0_34] : memref<16x128xf32, #tpu.memory_space<vmem>>, vector<1x128xf32>
    %112 = vector.shape_cast %111 : vector<1x128xf32> to vector<128xf32>
    %113 = arith.index_cast %c4_i32 : i32 to index
    %c0_35 = arith.constant 0 : index
    %114 = vector.load %arg4[%113, %c0_35] : memref<8x128xf32, #tpu.memory_space<vmem>>, vector<1x128xf32>
    %115 = vector.shape_cast %114 : vector<1x128xf32> to vector<128xf32>
    %116 = vector.shape_cast %112 : vector<128xf32> to vector<1x128xf32>
    tpu.vector_store %arg4[%113, %c0_35], %116 {strides = array<i32>} : memref<8x128xf32, #tpu.memory_space<vmem>>, vector<1x128xf32>,
    %c1_36 = arith.constant 1 : index
    %117 = arith.index_cast %c4_i32 : i32 to index
    %118 = memref.load %arg1[%c1_36, %117] : memref<3x8xi32, #tpu.memory_space<smem>>
    %119 = arith.index_cast %118 : i32 to index
    %c0_37 = arith.constant 0 : index
    %120 = vector.load %arg3[%119, %c0_37] : memref<8x128xf32, #tpu.memory_space<vmem>>, vector<1x128xf32>
    %121 = vector.shape_cast %120 : vector<1x128xf32> to vector<128xf32>
    %122 = arith.index_cast %c4_i32 : i32 to index
    %c0_38 = arith.constant 0 : index
    %123 = vector.load %arg5[%122, %c0_38] : memref<8x128xf32, #tpu.memory_space<vmem>>, vector<1x128xf32>
    %124 = vector.shape_cast %123 : vector<1x128xf32> to vector<128xf32>
    %125 = vector.shape_cast %121 : vector<128xf32> to vector<1x128xf32>
    tpu.vector_store %arg5[%122, %c0_38], %125 {strides = array<i32>} : memref<8x128xf32, #tpu.memory_space<vmem>>, vector<1x128xf32>,
    %c2_39 = arith.constant 2 : index
    %126 = arith.index_cast %c4_i32 : i32 to index
    %127 = memref.load %arg1[%c2_39, %126] : memref<3x8xi32, #tpu.memory_space<smem>>
    %128 = arith.index_cast %127 : i32 to index
    %c0_40 = arith.constant 0 : index
    %129 = vector.load %arg2[%128, %c0_40] : memref<16x128xf32, #tpu.memory_space<vmem>>, vector<1x128xf32>
    %130 = vector.shape_cast %129 : vector<1x128xf32> to vector<128xf32>
    %131 = arith.index_cast %c4_i32 : i32 to index
    %c0_41 = arith.constant 0 : index
    %132 = vector.load %arg6[%131, %c0_41] : memref<8x128xf32, #tpu.memory_space<vmem>>, vector<1x128xf32>
    %133 = vector.shape_cast %132 : vector<1x128xf32> to vector<128xf32>
    %134 = vector.shape_cast %130 : vector<128xf32> to vector<1x128xf32>
    tpu.vector_store %arg6[%131, %c0_41], %134 {strides = array<i32>} : memref<8x128xf32, #tpu.memory_space<vmem>>, vector<1x128xf32>,
    %c5_i32 = arith.constant 5 : i32
    %c0_42 = arith.constant 0 : index
    %135 = arith.index_cast %c5_i32 : i32 to index
    %136 = memref.load %arg1[%c0_42, %135] : memref<3x8xi32, #tpu.memory_space<smem>>
    %137 = arith.index_cast %136 : i32 to index
    %c0_43 = arith.constant 0 : index
    %138 = vector.load %arg2[%137, %c0_43] : memref<16x128xf32, #tpu.memory_space<vmem>>, vector<1x128xf32>
    %139 = vector.shape_cast %138 : vector<1x128xf32> to vector<128xf32>
    %140 = arith.index_cast %c5_i32 : i32 to index
    %c0_44 = arith.constant 0 : index
    %141 = vector.load %arg4[%140, %c0_44] : memref<8x128xf32, #tpu.memory_space<vmem>>, vector<1x128xf32>
    %142 = vector.shape_cast %141 : vector<1x128xf32> to vector<128xf32>
    %143 = vector.shape_cast %139 : vector<128xf32> to vector<1x128xf32>
    tpu.vector_store %arg4[%140, %c0_44], %143 {strides = array<i32>} : memref<8x128xf32, #tpu.memory_space<vmem>>, vector<1x128xf32>,
    %c1_45 = arith.constant 1 : index
    %144 = arith.index_cast %c5_i32 : i32 to index
    %145 = memref.load %arg1[%c1_45, %144] : memref<3x8xi32, #tpu.memory_space<smem>>
    %146 = arith.index_cast %145 : i32 to index
    %c0_46 = arith.constant 0 : index
    %147 = vector.load %arg3[%146, %c0_46] : memref<8x128xf32, #tpu.memory_space<vmem>>, vector<1x128xf32>
    %148 = vector.shape_cast %147 : vector<1x128xf32> to vector<128xf32>
    %149 = arith.index_cast %c5_i32 : i32 to index
    %c0_47 = arith.constant 0 : index
    %150 = vector.load %arg5[%149, %c0_47] : memref<8x128xf32, #tpu.memory_space<vmem>>, vector<1x128xf32>
    %151 = vector.shape_cast %150 : vector<1x128xf32> to vector<128xf32>
    %152 = vector.shape_cast %148 : vector<128xf32> to vector<1x128xf32>
    tpu.vector_store %arg5[%149, %c0_47], %152 {strides = array<i32>} : memref<8x128xf32, #tpu.memory_space<vmem>>, vector<1x128xf32>,
    %c2_48 = arith.constant 2 : index
    %153 = arith.index_cast %c5_i32 : i32 to index
    %154 = memref.load %arg1[%c2_48, %153] : memref<3x8xi32, #tpu.memory_space<smem>>
    %155 = arith.index_cast %154 : i32 to index
    %c0_49 = arith.constant 0 : index
    %156 = vector.load %arg2[%155, %c0_49] : memref<16x128xf32, #tpu.memory_space<vmem>>, vector<1x128xf32>
    %157 = vector.shape_cast %156 : vector<1x128xf32> to vector<128xf32>
    %158 = arith.index_cast %c5_i32 : i32 to index
    %c0_50 = arith.constant 0 : index
    %159 = vector.load %arg6[%158, %c0_50] : memref<8x128xf32, #tpu.memory_space<vmem>>, vector<1x128xf32>
    %160 = vector.shape_cast %159 : vector<1x128xf32> to vector<128xf32>
    %161 = vector.shape_cast %157 : vector<128xf32> to vector<1x128xf32>
    tpu.vector_store %arg6[%158, %c0_50], %161 {strides = array<i32>} : memref<8x128xf32, #tpu.memory_space<vmem>>, vector<1x128xf32>,
    %c6_i32 = arith.constant 6 : i32
    %c0_51 = arith.constant 0 : index
    %162 = arith.index_cast %c6_i32 : i32 to index
    %163 = memref.load %arg1[%c0_51, %162] : memref<3x8xi32, #tpu.memory_space<smem>>
    %164 = arith.index_cast %163 : i32 to index
    %c0_52 = arith.constant 0 : index
    %165 = vector.load %arg2[%164, %c0_52] : memref<16x128xf32, #tpu.memory_space<vmem>>, vector<1x128xf32>
    %166 = vector.shape_cast %165 : vector<1x128xf32> to vector<128xf32>
    %167 = arith.index_cast %c6_i32 : i32 to index
    %c0_53 = arith.constant 0 : index
    %168 = vector.load %arg4[%167, %c0_53] : memref<8x128xf32, #tpu.memory_space<vmem>>, vector<1x128xf32>
    %169 = vector.shape_cast %168 : vector<1x128xf32> to vector<128xf32>
    %170 = vector.shape_cast %166 : vector<128xf32> to vector<1x128xf32>
    tpu.vector_store %arg4[%167, %c0_53], %170 {strides = array<i32>} : memref<8x128xf32, #tpu.memory_space<vmem>>, vector<1x128xf32>,
    %c1_54 = arith.constant 1 : index
    %171 = arith.index_cast %c6_i32 : i32 to index
    %172 = memref.load %arg1[%c1_54, %171] : memref<3x8xi32, #tpu.memory_space<smem>>
    %173 = arith.index_cast %172 : i32 to index
    %c0_55 = arith.constant 0 : index
    %174 = vector.load %arg3[%173, %c0_55] : memref<8x128xf32, #tpu.memory_space<vmem>>, vector<1x128xf32>
    %175 = vector.shape_cast %174 : vector<1x128xf32> to vector<128xf32>
    %176 = arith.index_cast %c6_i32 : i32 to index
    %c0_56 = arith.constant 0 : index
    %177 = vector.load %arg5[%176, %c0_56] : memref<8x128xf32, #tpu.memory_space<vmem>>, vector<1x128xf32>
    %178 = vector.shape_cast %177 : vector<1x128xf32> to vector<128xf32>
    %179 = vector.shape_cast %175 : vector<128xf32> to vector<1x128xf32>
    tpu.vector_store %arg5[%176, %c0_56], %179 {strides = array<i32>} : memref<8x128xf32, #tpu.memory_space<vmem>>, vector<1x128xf32>,
    %c2_57 = arith.constant 2 : index
    %180 = arith.index_cast %c6_i32 : i32 to index
    %181 = memref.load %arg1[%c2_57, %180] : memref<3x8xi32, #tpu.memory_space<smem>>
    %182 = arith.index_cast %181 : i32 to index
    %c0_58 = arith.constant 0 : index
    %183 = vector.load %arg2[%182, %c0_58] : memref<16x128xf32, #tpu.memory_space<vmem>>, vector<1x128xf32>
    %184 = vector.shape_cast %183 : vector<1x128xf32> to vector<128xf32>
    %185 = arith.index_cast %c6_i32 : i32 to index
    %c0_59 = arith.constant 0 : index
    %186 = vector.load %arg6[%185, %c0_59] : memref<8x128xf32, #tpu.memory_space<vmem>>, vector<1x128xf32>
    %187 = vector.shape_cast %186 : vector<1x128xf32> to vector<128xf32>
    %188 = vector.shape_cast %184 : vector<128xf32> to vector<1x128xf32>
    tpu.vector_store %arg6[%185, %c0_59], %188 {strides = array<i32>} : memref<8x128xf32, #tpu.memory_space<vmem>>, vector<1x128xf32>,
    %c7_i32 = arith.constant 7 : i32
    %c0_60 = arith.constant 0 : index
    %189 = arith.index_cast %c7_i32 : i32 to index
    %190 = memref.load %arg1[%c0_60, %189] : memref<3x8xi32, #tpu.memory_space<smem>>
    %191 = arith.index_cast %190 : i32 to index
    %c0_61 = arith.constant 0 : index
    %192 = vector.load %arg2[%191, %c0_61] : memref<16x128xf32, #tpu.memory_space<vmem>>, vector<1x128xf32>
    %193 = vector.shape_cast %192 : vector<1x128xf32> to vector<128xf32>
    %194 = arith.index_cast %c7_i32 : i32 to index
    %c0_62 = arith.constant 0 : index
    %195 = vector.load %arg4[%194, %c0_62] : memref<8x128xf32, #tpu.memory_space<vmem>>, vector<1x128xf32>
    %196 = vector.shape_cast %195 : vector<1x128xf32> to vector<128xf32>
    %197 = vector.shape_cast %193 : vector<128xf32> to vector<1x128xf32>
    tpu.vector_store %arg4[%194, %c0_62], %197 {strides = array<i32>} : memref<8x128xf32, #tpu.memory_space<vmem>>, vector<1x128xf32>,
    %c1_63 = arith.constant 1 : index
    %198 = arith.index_cast %c7_i32 : i32 to index
    %199 = memref.load %arg1[%c1_63, %198] : memref<3x8xi32, #tpu.memory_space<smem>>
    %200 = arith.index_cast %199 : i32 to index
    %c0_64 = arith.constant 0 : index
    %201 = vector.load %arg3[%200, %c0_64] : memref<8x128xf32, #tpu.memory_space<vmem>>, vector<1x128xf32>
    %202 = vector.shape_cast %201 : vector<1x128xf32> to vector<128xf32>
    %203 = arith.index_cast %c7_i32 : i32 to index
    %c0_65 = arith.constant 0 : index
    %204 = vector.load %arg5[%203, %c0_65] : memref<8x128xf32, #tpu.memory_space<vmem>>, vector<1x128xf32>
    %205 = vector.shape_cast %204 : vector<1x128xf32> to vector<128xf32>
    %206 = vector.shape_cast %202 : vector<128xf32> to vector<1x128xf32>
    tpu.vector_store %arg5[%203, %c0_65], %206 {strides = array<i32>} : memref<8x128xf32, #tpu.memory_space<vmem>>, vector<1x128xf32>,
    %c2_66 = arith.constant 2 : index
    %207 = arith.index_cast %c7_i32 : i32 to index
    %208 = memref.load %arg1[%c2_66, %207] : memref<3x8xi32, #tpu.memory_space<smem>>
    %209 = arith.index_cast %208 : i32 to index
    %c0_67 = arith.constant 0 : index
    %210 = vector.load %arg2[%209, %c0_67] : memref<16x128xf32, #tpu.memory_space<vmem>>, vector<1x128xf32>
    %211 = vector.shape_cast %210 : vector<1x128xf32> to vector<128xf32>
    %212 = arith.index_cast %c7_i32 : i32 to index
    %c0_68 = arith.constant 0 : index
    %213 = vector.load %arg6[%212, %c0_68] : memref<8x128xf32, #tpu.memory_space<vmem>>, vector<1x128xf32>
    %214 = vector.shape_cast %213 : vector<1x128xf32> to vector<128xf32>
    %215 = vector.shape_cast %211 : vector<128xf32> to vector<1x128xf32>
    tpu.vector_store %arg6[%212, %c0_68], %215 {strides = array<i32>} : memref<8x128xf32, #tpu.memory_space<vmem>>, vector<1x128xf32>,
    %c8_i32 = arith.constant 8 : i32
    return
  }
  func.func @transform_0(%arg0: i32) -> (i32, i32) {
    %c0_i32 = arith.constant 0 : i32
    %c0_i32_0 = arith.constant 0 : i32
    return %c0_i32, %arg0 : i32, i32
  }
  func.func @transform_1(%arg0: i32) -> (i32, i32) {
    %c0_i32 = arith.constant 0 : i32
    %c0_i32_0 = arith.constant 0 : i32
    %c0_i32_1 = arith.constant 0 : i32
    return %c0_i32, %c0_i32_0 : i32, i32
  }
  func.func @transform_2(%arg0: i32) -> (i32, i32) {
    %c0_i32 = arith.constant 0 : i32
    %c0_i32_0 = arith.constant 0 : i32
    %c0_i32_1 = arith.constant 0 : i32
    return %c0_i32, %c0_i32_0 : i32, i32
  }
  func.func @transform_3(%arg0: i32) -> (i32, i32) {
    %c0_i32 = arith.constant 0 : i32
    %c0_i32_0 = arith.constant 0 : i32
    return %arg0, %c0_i32 : i32, i32
  }
  func.func @transform_4(%arg0: i32) -> (i32, i32) {
    %c0_i32 = arith.constant 0 : i32
    %c0_i32_0 = arith.constant 0 : i32
    return %arg0, %c0_i32 : i32, i32
  }
  func.func @transform_5(%arg0: i32) -> (i32, i32) {
    %c0_i32 = arith.constant 0 : i32
    %c0_i32_0 = arith.constant 0 : i32
    return %arg0, %c0_i32 : i32, i32
  }
}

</mosaic_0001>

<bundles_post_ra>
// kernel: tpu_custom_call.1
= control target key start
LH: loop header
LB: loop body
LE: loop exit
PB: predicated region body
PF: predicated region fallthrough
CT: control target
= control target key end

     0   :  { %11 = vsyncpa [#allocation5], 0  ;;  %s474_s0 = inlined_call_operand.hbm [shape: s32[3,8], index: 0, kind: input, shape index: {}]   ;;  %s475_s1 = inlined_call_operand.hbm [shape: f32[16,128], index: 1, kind: input, shape index: {}]   ;;  %s476_s2 = inlined_call_operand.hbm [shape: f32[8,128], index: 2, kind: input, shape index: {}]   ;;  %s477_s3 = inlined_call_operand.hbm [shape: f32[8,128], index: 3, kind: output, shape index: {0}]   ;;  %s478_s4 = inlined_call_operand.hbm [shape: f32[8,128], index: 4, kind: output, shape index: {1}]   ;;  %s479_s5 = inlined_call_operand.hbm [shape: f32[8,128], index: 5, kind: output, shape index: {2}]  }
   0x1   :  { %12 = vsyncpa [#allocation3], 0 }
   0x2   :  { %13 = vsyncpa [#allocation8], 0 }
   0x3   :  { %14 = vsyncpa [#allocation4], 0 }
   0x4   :  { %15 = vsyncpa [#allocation11], 0  ;;  %s21_s20 = sshll.u32 %s474_s0, 4  ;;  %s29_s23 = sshll.u32 %s475_s1, 4  ;;  %s22_s20 = int_to_ptr.hbm [resolvable:$true] %s21_s20  ;;  %s30_s23 = int_to_ptr.hbm [resolvable:$true] %s29_s23 }
   0x5   :  { %s405_s24 = smov [#allocation2]   ;;  %s406_s25 = smov [#allocation6]  }
   0x6   :  { %24 = dma.hbm_to_smem %s22_s20, 64, %s405_s24, [#allocation5]  }
   0x7   :  { %s31_s26 = sshll.u32 %s406_s25, 4  ;;  %s407_s27 = smov 128   ;;  %s32_s26 = int_to_ptr.vmem [resolvable:$true] %s31_s26 }
   0x8   :  { %s408_s28 = smov 8   ;;  %s43_s6 = sshll.u32 %s476_s2, 4  ;;  %s44_s6 = int_to_ptr.hbm [resolvable:$true] %s43_s6 }
   0x9   :  { %37 = dma.hbm_to_vmem [thread:$0]  %s30_s23, 256, %s32_s26, [#allocation3], %s407_s27, %s407_s27, %s408_s28  }
   0xa   :  { %s409_s0 = smov [#allocation7]  }
   0xb   :  { %s45_s7 = sshll.u32 %s409_s0, 4  ;;  %s46_s7 = int_to_ptr.vmem [resolvable:$true] %s45_s7 }
   0xc   :  { %48 = dma.hbm_to_vmem [thread:$0]  %s44_s6, 128, %s46_s7, [#allocation8]  }
   0xd   :  { %395 = dma.done.wait [#allocation5], 64  }
   0xe   :  { %396 = vsyncadd [#allocation5], 4294967232 }
   0xf   :  { %397 = dma.done.wait [#allocation3], 256  }
  0x10   :  { %398 = vsyncadd [#allocation3], 4294967040 }
  0x11   :  { %399 = dma.done.wait [#allocation8], 128  }
  0x12   :  { %400 = vsyncadd [#allocation8], 4294967168 }
  0x13   :  { %61 = sfence }
  0x14   :  { %s232_s1 = sld [smem:[#allocation2 + $0x80]] }
  0x15   :  { %s235_s8 = sld [smem:[#allocation2 + $0x81]] }
  0x16   :  { %s238_s9 = sld [smem:[#allocation2 + $0x82]] }
  0x17   :  { %s241_s10 = sld [smem:[#allocation2 + $0x83]] }
  0x18   :  { %s244_s11 = sld [smem:[#allocation2 + $0x84]] }
  0x19   :  { %s247_s12 = sld [smem:[#allocation2 + $0x85]] }
  0x1a   :  { %s250_s13 = sld [smem:[#allocation2 + $0x86]]  ;;  %s67_s2 = scalar_lea.vmem [#allocation7], %s232_s1 }
  0x1b   :  { %v68_v0 = vld [vmem:[%s67_s2] sm:$0x1]  ;;  %s253_s14 = sld [smem:[#allocation2 + $0x87]]  ;;  %s79_s15 = scalar_lea.vmem [#allocation7], %s235_s8 }
  0x1c   :  { %69 = vst [vmem:[#allocation10] sm:$0x1] %v68_v0  ;;  %v80_v1 = vld [vmem:[%s79_s15] sm:$0x1]  ;;  %s91_s16 = scalar_lea.vmem [#allocation7], %s238_s9  ;;  %s62_s22 = sld [smem:[#allocation2]] }
  0x1d   :  { %81 = vst [vmem:[#allocation10 + $0x1] sm:$0x1] %v80_v1  ;;  %v92_v2 = vld [vmem:[%s91_s16] sm:$0x1]  ;;  %s103_s17 = scalar_lea.vmem [#allocation7], %s241_s10  ;;  %s233_s23 = sld [smem:[#allocation2 + $0x100]] }
  0x1e   :  { %93 = vst [vmem:[#allocation10 + $0x2] sm:$0x1] %v92_v2  ;;  %v104_v3 = vld [vmem:[%s103_s17] sm:$0x1]  ;;  %s115_s18 = scalar_lea.vmem [#allocation7], %s244_s11  ;;  %s234_s24 = sld [smem:[#allocation2 + $0x1]] }
  0x1f   :  { %105 = vst [vmem:[#allocation10 + $0x3] sm:$0x1] %v104_v3  ;;  %v116_v4 = vld [vmem:[%s115_s18] sm:$0x1]  ;;  %s127_s19 = scalar_lea.vmem [#allocation7], %s247_s12  ;;  %s236_s25 = sld [smem:[#allocation2 + $0x101]] }
  0x20   :  { %117 = vst [vmem:[#allocation10 + $0x4] sm:$0x1] %v116_v4  ;;  %v128_v5 = vld [vmem:[%s127_s19] sm:$0x1]  ;;  %s139_s20 = scalar_lea.vmem [#allocation7], %s250_s13  ;;  %s237_s26 = sld [smem:[#allocation2 + $0x2]] }
  0x21   :  { %129 = vst [vmem:[#allocation10 + $0x5] sm:$0x1] %v128_v5  ;;  %v140_v6 = vld [vmem:[%s139_s20] sm:$0x1]  ;;  %s151_s21 = scalar_lea.vmem [#allocation7], %s253_s14  ;;  %s239_s27 = sld [smem:[#allocation2 + $0x102]] }
  0x22   :  { %141 = vst [vmem:[#allocation10 + $0x6] sm:$0x1] %v140_v6  ;;  %v152_v7 = vld [vmem:[%s151_s21] sm:$0x1]  ;;  %s240_s28 = sld [smem:[#allocation2 + $0x3]]  ;;  %s63_s29 = scalar_lea.vmem [#allocation6], %s62_s22 }
  0x23   :  { %153 = vst [vmem:[#allocation10 + $0x7] sm:$0x1] %v152_v7  ;;  %v64_v8 = vld [vmem:[%s63_s29] sm:$0x1]  ;;  %s242_s30 = sld [smem:[#allocation2 + $0x103]]  ;;  %s71_s6 = scalar_lea.vmem [#allocation6], %s233_s23 }
  0x24   :  { %65 = vst [vmem:[#allocation9] sm:$0x1] %v64_v8  ;;  %v72_v9 = vld [vmem:[%s71_s6] sm:$0x1]  ;;  %s75_s0 = scalar_lea.vmem [#allocation6], %s234_s24  ;;  %s410_s8 = smov [#allocation10]  }
  0x25   :  { %73 = vst [vmem:[#allocation12] sm:$0x1] %v72_v9  ;;  %v76_v10 = vld [vmem:[%s75_s0] sm:$0x1]  ;;  %s83_s7 = scalar_lea.vmem [#allocation6], %s236_s25  ;;  %s452_s9 = sshll.u32 %s410_s8, 4  ;;  %s175_s9 = int_to_ptr.vmem [resolvable:$true] %s452_s9 }
  0x26   :  { %77 = vst [vmem:[#allocation9 + $0x1] sm:$0x1] %v76_v10  ;;  %v84_v11 = vld [vmem:[%s83_s7] sm:$0x1]  ;;  %s87_s1 = scalar_lea.vmem [#allocation6], %s237_s26  ;;  %s176_s2 = sshll.u32 %s478_s4, 4  ;;  %s460_s2 = int_to_ptr.hbm [resolvable:$true] %s176_s2 }
  0x27   :  { %85 = vst [vmem:[#allocation12 + $0x1] sm:$0x1] %v84_v11  ;;  %v88_v12 = vld [vmem:[%s87_s1] sm:$0x1]  ;;  %s95_s10 = scalar_lea.vmem [#allocation6], %s239_s27  ;;  %s243_s15 = sld [smem:[#allocation2 + $0x4]] }
  0x28   :  { %89 = vst [vmem:[#allocation9 + $0x2] sm:$0x1] %v88_v12  ;;  %v96_v13 = vld [vmem:[%s95_s10] sm:$0x1]  ;;  %s99_s11 = scalar_lea.vmem [#allocation6], %s240_s28  ;;  %s245_s16 = sld [smem:[#allocation2 + $0x104]] }
  0x29   :  { %97 = vst [vmem:[#allocation12 + $0x2] sm:$0x1] %v96_v13  ;;  %v100_v14 = vld [vmem:[%s99_s11] sm:$0x1]  ;;  %s107_s14 = scalar_lea.vmem [#allocation6], %s242_s30  ;;  %s411_s17 = smov [#allocation9]  }
  0x2a   :  { %101 = vst [vmem:[#allocation9 + $0x3] sm:$0x1] %v100_v14  ;;  %v108_v15 = vld [vmem:[%s107_s14] sm:$0x1]  ;;  %s457_s18 = sshll.u32 %s411_s17, 4  ;;  %s246_s19 = sld [smem:[#allocation2 + $0x5]]  ;;  %s164_s18 = int_to_ptr.vmem [resolvable:$true] %s457_s18 }
  0x2b   :  { %109 = vst [vmem:[#allocation12 + $0x3] sm:$0x1] %v108_v15  ;;  %s248_s20 = sld [smem:[#allocation2 + $0x105]]  ;;  %s165_s28 = sshll.u32 %s477_s3, 4  ;;  %s166_s28 = int_to_ptr.hbm [resolvable:$true] %s165_s28 }
  0x2c   :  { %s249_s21 = sld [smem:[#allocation2 + $0x6]]  ;;  %s412_s30 = smov [#allocation12]  }
  0x2d   :  { %s251_s22 = sld [smem:[#allocation2 + $0x106]]  ;;  %s111_s4 = scalar_lea.vmem [#allocation6], %s243_s15 }
  0x2e   :  { %s252_s23 = sld [smem:[#allocation2 + $0x7]]  ;;  %v112_v16 = vld [vmem:[%s111_s4] sm:$0x1]  ;;  %s119_s25 = scalar_lea.vmem [#allocation6], %s245_s16 }
  0x2f   :  { %s254_s24 = sld [smem:[#allocation2 + $0x107]]  ;;  %113 = vst [vmem:[#allocation9 + $0x4] sm:$0x1] %v112_v16  ;;  %v120_v17 = vld [vmem:[%s119_s25] sm:$0x1]  ;;  %s185_s6 = sshll.u32 %s412_s30, 4  ;;  %s186_s6 = int_to_ptr.vmem [resolvable:$true] %s185_s6 }
  0x30   :  { %121 = vst [vmem:[#allocation12 + $0x4] sm:$0x1] %v120_v17  ;;  %s123_s29 = scalar_lea.vmem [#allocation6], %s246_s19  ;;  %s187_s8 = sshll.u32 %s479_s5, 4  ;;  %s188_s8 = int_to_ptr.hbm [resolvable:$true] %s187_s8 }
  0x31   :  { %v124_v18 = vld [vmem:[%s123_s29] sm:$0x1]  ;;  %s131_s0 = scalar_lea.vmem [#allocation6], %s248_s20 }
  0x32   :  { %125 = vst [vmem:[#allocation9 + $0x5] sm:$0x1] %v124_v18  ;;  %v132_v19 = vld [vmem:[%s131_s0] sm:$0x1]  ;;  %s135_s10 = scalar_lea.vmem [#allocation6], %s249_s21 }
  0x33   :  { %133 = vst [vmem:[#allocation12 + $0x5] sm:$0x1] %v132_v19  ;;  %v136_v20 = vld [vmem:[%s135_s10] sm:$0x1]  ;;  %s143_s3 = scalar_lea.vmem [#allocation6], %s251_s22 }
  0x34   :  { %137 = vst [vmem:[#allocation9 + $0x6] sm:$0x1] %v136_v20  ;;  %v144_v21 = vld [vmem:[%s143_s3] sm:$0x1]  ;;  %s147_s11 = scalar_lea.vmem [#allocation6], %s252_s23 }
  0x35   :  { %145 = vst [vmem:[#allocation12 + $0x6] sm:$0x1] %v144_v21  ;;  %v148_v22 = vld [vmem:[%s147_s11] sm:$0x1]  ;;  %s155_s12 = scalar_lea.vmem [#allocation6], %s254_s24 }
  0x36   :  { %149 = vst [vmem:[#allocation9 + $0x7] sm:$0x1] %v148_v22  ;;  %v156_v23 = vld [vmem:[%s155_s12] sm:$0x1]  ;;  %179 = dma.vmem_to_hbm [thread:$0]  %s175_s9, 128, %s460_s2, [#allocation11]  }
  0x37   :  { %157 = vst [vmem:[#allocation12 + $0x7] sm:$0x1] %v156_v23  ;;  %168 = dma.vmem_to_hbm [thread:$0]  %s164_s18, 128, %s166_s28, [#allocation4]  }
  0x38   :  { %190 = dma.vmem_to_hbm [thread:$0]  %s186_s6, 128, %s188_s8, [#allocation11]  }
  0x39   :  { %401 = dma.done.wait [#allocation4], 128  }
  0x3a   :  { %402 = vsyncadd [#allocation4], 4294967168 }
  0x3b   :  { %403 = dma.done.wait [#allocation11], 256  }
  0x3c   :  { %404 = vsyncadd [#allocation11], 4294967040 }
  0x3d   :  { %203 = vsyncpa [#allocation3], 1 }
  0x3e   :  { %204 = vsyncpa [#allocation8], 1 }
  0x3f   :  { %205 = vsyncpa [#allocation4], 1 }
  0x40   :  { %206 = vsyncpa [#allocation11], 1 }
  0x41   :  { %207 = vsyncpa [#allocation5], 1 }

</bundles_post_ra>
